<compile_context>
chip_gen: v5e
topology: v5e:2x2
jax: 0.10.0
libtpu: 0.0.40
codegen_flags: <defaults>
</compile_context>

<pallas_src>
import jax
import jax.numpy as jnp
from jax.experimental import pallas as pl
from jax.experimental.pallas import tpu as pltpu

_MIB = 1024 * 1024


def _deinterleave_kernel(x_ref, re_ref, im_ref, t_ref):
    """x_ref: (tr, C) with lanes [re, im, re, im, ...].
    re_ref, im_ref: (tr, C//2).  t_ref: (C, tr) VMEM scratch."""
    half = re_ref.shape[-1]
    # Move the interleaved axis from lanes to sublanes (XLU transpose) so the
    # even/odd split becomes a sublane-strided ref load (stride on the lane
    # dim is not supported; stride on the sublane dim is).
    t_ref[...] = x_ref[...].T
    re_ref[...] = t_ref[pl.ds(0, half, stride=2), :].T   # original even lanes
    im_ref[...] = t_ref[pl.ds(1, half, stride=2), :].T   # original odd lanes


def _round_down(x, m):
    return (x // m) * m


def interleaved_real_to_cplx(x, *, max_block_bytes=8 * _MIB,
                             vmem_limit_bytes=56 * _MIB):
    """x: [..., 2*d] interleaved -> (real [..., d], imag [..., d])."""
    L = x.shape[-1]
    if L % 2 != 0:
        raise ValueError("last dimension must be even")
    d = L // 2
    lead = x.shape[:-1]
    dtype = x.dtype
    itemsize = jnp.dtype(dtype).itemsize
    N = x.size

    # Pallas path needs a <=32-bit dtype and a flat size that is a multiple of
    # 256 (so the slab width C can be a multiple of 256 and both output halves
    # are lane-dense).  Anything else: plain XLA slicing (cheaper than padding
    # the whole tensor through an extra HBM round trip).
    if itemsize > 4 or N == 0 or N % 256 != 0:
        return x[..., 0::2], x[..., 1::2]

    # --- lane-dense slab (R, C): largest C (multiple of 256, <= 4096) that
    # divides N, preferring widths that leave R >= 128 rows (so row tiles can
    # be 128-aligned), then R >= 8 (full sublane groups).
    divisors = [c for c in range(4096, 255, -256) if c <= N and N % c == 0]
    C = next((c for c in divisors if N // c >= 128),
             next((c for c in divisors if N // c >= 8), divisors[0]))
    R = N // C
    half = C // 2
    slab = x.reshape(R, C)

    # --- row tile: 128-aligned, sized from the VMEM budget, but small enough
    # to give >= ~4 grid steps (>= 2 per TensorCore on v7x megacore) when
    # there is enough work.  A trailing partial row block is masked by Pallas
    # (per-row independent compute, so garbage OOB reads never reach valid
    # outputs).
    row_bytes = C * itemsize
    if R <= 128:
        tr = R                                   # single full-dim row block
    else:
        tr_budget = max(128, _round_down(max_block_bytes // row_bytes, 128))
        tr_quarter = max(128, _round_down(R // 4, 128))
        tr = min(tr_budget, tr_quarter)
    grid = (pl.cdiv(R, tr),)

    re2, im2 = pl.pallas_call(
        _deinterleave_kernel,
        out_shape=(jax.ShapeDtypeStruct((R, half), dtype),
                   jax.ShapeDtypeStruct((R, half), dtype)),
        grid_spec=pltpu.PrefetchScalarGridSpec(
            num_scalar_prefetch=0,
            grid=grid,
            in_specs=[pl.BlockSpec((tr, C), lambda i: (i, 0))],
            out_specs=[pl.BlockSpec((tr, half), lambda i: (i, 0)),
                       pl.BlockSpec((tr, half), lambda i: (i, 0))],
            scratch_shapes=[pltpu.VMEM((C, tr), dtype)],
        ),
        compiler_params=pltpu.CompilerParams(
            dimension_semantics=("parallel",),
            vmem_limit_bytes=vmem_limit_bytes,
        ),
        cost_estimate=pl.CostEstimate(
            flops=0, transcendentals=0, bytes_accessed=2 * N * itemsize),
    )(slab)

    real = re2.reshape(*lead, d)
    imag = im2.reshape(*lead, d)
    return real, imag


if __name__ == "__main__":
    key = jax.random.PRNGKey(0)
    k1, k2 = jax.random.split(key)

    # Module-spec shape: batch=2, channels=4, spatial=16, last dim 2*d=32.
    x = jax.random.normal(k1, (2, 4, 16, 32), dtype=jnp.float32)
    real, imag = jax.block_until_ready(interleaved_real_to_cplx(x))
    assert real.shape == (2, 4, 16, 16) and imag.shape == (2, 4, 16, 16)
    assert jnp.array_equal(real, x[..., 0::2])
    assert jnp.array_equal(imag, x[..., 1::2])

    # Coverage: a size that exercises 128-aligned row tiles, grid > 1 and a
    # partial trailing row block (C=1280, R=160, tr=128, grid=2).
    x2 = jax.random.normal(k2, (2, 100, 1024), dtype=jnp.float32)
    real2, imag2 = jax.block_until_ready(interleaved_real_to_cplx(x2))
    assert real2.shape == (2, 100, 512) and imag2.shape == (2, 100, 512)
    assert jnp.array_equal(real2, x2[..., 0::2])
    assert jnp.array_equal(imag2, x2[..., 1::2])

    print("KERNEL_OK")
</pallas_src>

<mosaic_0001>
module attributes {stable_mosaic.version = 11 : i64} {
  func.func @_deinterleave_kernel(%arg0: i32, %arg1: memref<8x512xf32, #tpu.memory_space<vmem>>, %arg2: memref<8x256xf32, #tpu.memory_space<vmem>>, %arg3: memref<8x256xf32, #tpu.memory_space<vmem>>, %arg4: memref<512x8xf32, #tpu.memory_space<vmem>>) attributes {dimension_semantics = [#tpu.dimension_semantics<parallel>], iteration_bounds = array<i64: 1>, scalar_prefetch = 0 : i64, scratch_operands = 1 : i64, tpu.core_type = #tpu.core_type<tc>, window_params = [{transform_indices = @transform_0, window_bounds = array<i64: 8, 512>}, {transform_indices = @transform_1, window_bounds = array<i64: 8, 256>}, {transform_indices = @transform_2, window_bounds = array<i64: 8, 256>}]} {
    %c0 = arith.constant 0 : index
    %c0_0 = arith.constant 0 : index
    %0 = vector.load %arg1[%c0, %c0_0] : memref<8x512xf32, #tpu.memory_space<vmem>>, vector<8x512xf32>
    %1 = tpu.transpose %0, [1, 0] : vector<8x512xf32> -> vector<512x8xf32>
    %c0_1 = arith.constant 0 : index
    %c0_2 = arith.constant 0 : index
    %2 = vector.load %arg4[%c0_1, %c0_2] : memref<512x8xf32, #tpu.memory_space<vmem>>, vector<512x8xf32>
    tpu.vector_store %arg4[%c0_1, %c0_2], %1 {strides = array<i32>} : memref<512x8xf32, #tpu.memory_space<vmem>>, vector<512x8xf32>,
    %c0_3 = arith.constant 0 : index
    %c0_4 = arith.constant 0 : index
    %3 = tpu.strided_load %arg4[%c0_3, %c0_4] {strides = array<i32: 2, 1>} : memref<512x8xf32, #tpu.memory_space<vmem>>, vector<256x8xf32>
    %4 = tpu.transpose %3, [1, 0] : vector<256x8xf32> -> vector<8x256xf32>
    %c0_5 = arith.constant 0 : index
    %c0_6 = arith.constant 0 : index
    %5 = vector.load %arg2[%c0_5, %c0_6] : memref<8x256xf32, #tpu.memory_space<vmem>>, vector<8x256xf32>
    tpu.vector_store %arg2[%c0_5, %c0_6], %4 {strides = array<i32>} : memref<8x256xf32, #tpu.memory_space<vmem>>, vector<8x256xf32>,
    %c1 = arith.constant 1 : index
    %c0_7 = arith.constant 0 : index
    %6 = tpu.strided_load %arg4[%c1, %c0_7] {strides = array<i32: 2, 1>} : memref<512x8xf32, #tpu.memory_space<vmem>>, vector<256x8xf32>
    %7 = tpu.transpose %6, [1, 0] : vector<256x8xf32> -> vector<8x256xf32>
    %c0_8 = arith.constant 0 : index
    %c0_9 = arith.constant 0 : index
    %8 = vector.load %arg3[%c0_8, %c0_9] : memref<8x256xf32, #tpu.memory_space<vmem>>, vector<8x256xf32>
    tpu.vector_store %arg3[%c0_8, %c0_9], %7 {strides = array<i32>} : memref<8x256xf32, #tpu.memory_space<vmem>>, vector<8x256xf32>,
    return
  }
  func.func @transform_0(%arg0: i32) -> (i32, i32) {
    %c0_i32 = arith.constant 0 : i32
    %c0_i32_0 = arith.constant 0 : i32
    return %arg0, %c0_i32 : i32, i32
  }
  func.func @transform_1(%arg0: i32) -> (i32, i32) {
    %c0_i32 = arith.constant 0 : i32
    %c0_i32_0 = arith.constant 0 : i32
    return %arg0, %c0_i32 : i32, i32
  }
  func.func @transform_2(%arg0: i32) -> (i32, i32) {
    %c0_i32 = arith.constant 0 : i32
    %c0_i32_0 = arith.constant 0 : i32
    return %arg0, %c0_i32 : i32, i32
  }
}

</mosaic_0001>

<bundles_post_ra>
// kernel: tpu_custom_call.1
= control target key start
LH: loop header
LB: loop body
LE: loop exit
PB: predicated region body
PF: predicated region fallthrough
CT: control target
= control target key end

     0   :  { %8 = vsyncpa [#allocation4], 0  ;;  %s688_s0 = inlined_call_operand.hbm [shape: f32[8,512], index: 0, kind: input, shape index: {}]   ;;  %s689_s1 = inlined_call_operand.hbm [shape: f32[8,256], index: 1, kind: output, shape index: {0}]   ;;  %s690_s2 = inlined_call_operand.hbm [shape: f32[8,256], index: 2, kind: output, shape index: {1}]  }
   0x1   :  { %9 = vsyncpa [#allocation5], 0 }
   0x2   :  { %10 = vsyncpa [#allocation8], 0  ;;  %s16_s11 = sshll.u32 %s688_s0, 4  ;;  %s597_s12 = smov [#allocation3]   ;;  %s17_s11 = int_to_ptr.hbm [resolvable:$true] %s16_s11 }
   0x3   :  { %s18_s13 = sshll.u32 %s597_s12, 4  ;;  %s19_s13 = int_to_ptr.vmem [resolvable:$true] %s18_s13 }
   0x4   :  { %21 = dma.hbm_to_vmem [thread:$0]  %s17_s11, 512, %s19_s13, [#allocation4]  }
   0x5   :  { %591 = dma.done.wait [#allocation4], 512  }
   0x6   :  { %592 = vsyncadd [#allocation4], 4294966784  ;;  %v26_v0 = vld [vmem:[#allocation3] sm:$0xff]  ;;  %v28_v1 = vld [vmem:[#allocation3 + $0x10] sm:$0xff]  ;;  %vm158_vm0 = vcmask 64512   ;;  %s598_s0 = smov [#allocation7]  }
   0x7   :  { %30 = vxpose.xlu0.b32.start.end [1/1] (short) %v26_v0, 128  ;;  %94 = vxpose.xlu1.b32.start.end [1/1] (short) %v28_v1, 128  ;;  %v27_v2 = vld [vmem:[#allocation3 + $0x8] sm:$0xff]  ;;  %v29_v3 = vld [vmem:[#allocation3 + $0x18] sm:$0xff]  ;;  %s498_s14 = sshll.u32 %s598_s0, 4  ;;  %s500_s17 = sshll.u32 %s690_s2, 4  ;;  %s499_s14 = int_to_ptr.vmem [resolvable:$true] %s498_s14  ;;  %s501_s17 = int_to_ptr.hbm [resolvable:$true] %s500_s17 }
   0x8   :  { %s599_s18 = smov [#allocation6]   ;;  %s489_s22 = sshll.u32 %s689_s1, 4  ;;  %s490_s22 = int_to_ptr.hbm [resolvable:$true] %s489_s22 }
   0x9   :  { %s487_s19 = sshll.u32 %s599_s18, 4  ;;  %s488_s19 = int_to_ptr.vmem [resolvable:$true] %s487_s19 }
  0x87   :  { %62 = vxpose.xlu0.b32.start.end [1/1] (short) %v27_v2, 128  ;;  %126 = vxpose.xlu1.b32.start.end [1/1] (short) %v29_v3, 128 }
  0xab   :  { %v46_v4 = vpop.trf.xlu0  ;;  %v110_v18 = vpop.trf.xlu1 }
  0xac   :  { %159 = vst.msk [vmem:[#allocation2] sm:$0xff] %vm158_vm0, %v46_v4 }
  0xad   :  { %191 = vst.msk [vmem:[#allocation2 + $0x100] sm:$0xff] %vm158_vm0, %v110_v18 }
  0xb3   :  { %v47_v5 = vpop.trf.xlu0  ;;  %v111_v21 = vpop.trf.xlu1 }
  0xb4   :  { %160 = vst.msk [vmem:[#allocation2 + $0x8] sm:$0xff] %vm158_vm0, %v47_v5 }
  0xb5   :  { %192 = vst.msk [vmem:[#allocation2 + $0x108] sm:$0xff] %vm158_vm0, %v111_v21 }
  0xbb   :  { %v48_v6 = vpop.trf.xlu0  ;;  %v223_v7 = vld [vmem:[#allocation2] ss:$2 sm:$0xff]  ;;  %v353_v23 = vld [vmem:[#allocation2 + $0x1] ss:$2 sm:$0xff]  ;;  %v112_v24 = vpop.trf.xlu1 }
  0xbc   :  { %161 = vst.msk [vmem:[#allocation2 + $0x10] sm:$0xff] %vm158_vm0, %v48_v6  ;;  %286 = vxpose.xlu2.b32.start [1/16] (narrow) %v223_v7, 8  ;;  %v385_v25 = vld [vmem:[#allocation2 + $0x101] ss:$2 sm:$0xff] }
  0xbd   :  { %193 = vst.msk [vmem:[#allocation2 + $0x110] sm:$0xff] %vm158_vm0, %v112_v24 }
  0xc3   :  { %v49_v8 = vpop.trf.xlu0  ;;  %v113_v29 = vpop.trf.xlu1 }
  0xc4   :  { %162 = vst.msk [vmem:[#allocation2 + $0x18] sm:$0xff] %vm158_vm0, %v49_v8 }
  0xc5   :  { %194 = vst.msk [vmem:[#allocation2 + $0x118] sm:$0xff] %vm158_vm0, %v113_v29 }
  0xcb   :  { %v50_v9 = vpop.trf.xlu0  ;;  %v225_v10 = vld [vmem:[#allocation2 + $0x10] ss:$2 sm:$0xff]  ;;  %v355_v28 = vld [vmem:[#allocation2 + $0x11] ss:$2 sm:$0xff]  ;;  %v114_v32 = vpop.trf.xlu1 }
  0xcc   :  { %163 = vst.msk [vmem:[#allocation2 + $0x20] sm:$0xff] %vm158_vm0, %v50_v9  ;;  %287 = vxpose.xlu2.b32.cont [2/16] (narrow) %v225_v10, 8  ;;  %v387_v33 = vld [vmem:[#allocation2 + $0x111] ss:$2 sm:$0xff] }
  0xcd   :  { %195 = vst.msk [vmem:[#allocation2 + $0x120] sm:$0xff] %vm158_vm0, %v114_v32 }
  0xd3   :  { %v51_v11 = vpop.trf.xlu0  ;;  %v115_v37 = vpop.trf.xlu1 }
  0xd4   :  { %164 = vst.msk [vmem:[#allocation2 + $0x28] sm:$0xff] %vm158_vm0, %v51_v11 }
  0xd5   :  { %196 = vst.msk [vmem:[#allocation2 + $0x128] sm:$0xff] %vm158_vm0, %v115_v37 }
  0xdb   :  { %v52_v12 = vpop.trf.xlu0  ;;  %v227_v13 = vld [vmem:[#allocation2 + $0x20] ss:$2 sm:$0xff]  ;;  %v357_v31 = vld [vmem:[#allocation2 + $0x21] ss:$2 sm:$0xff]  ;;  %v116_v40 = vpop.trf.xlu1 }
  0xdc   :  { %165 = vst.msk [vmem:[#allocation2 + $0x30] sm:$0xff] %vm158_vm0, %v52_v12  ;;  %288 = vxpose.xlu2.b32.cont [3/16] (narrow) %v227_v13, 8  ;;  %v389_v41 = vld [vmem:[#allocation2 + $0x121] ss:$2 sm:$0xff] }
  0xdd   :  { %197 = vst.msk [vmem:[#allocation2 + $0x130] sm:$0xff] %vm158_vm0, %v116_v40 }
  0xe3   :  { %v53_v14 = vpop.trf.xlu0  ;;  %v117_v45 = vpop.trf.xlu1 }
  0xe4   :  { %166 = vst.msk [vmem:[#allocation2 + $0x38] sm:$0xff] %vm158_vm0, %v53_v14 }
  0xe5   :  { %198 = vst.msk [vmem:[#allocation2 + $0x138] sm:$0xff] %vm158_vm0, %v117_v45 }
  0xeb   :  { %v54_v15 = vpop.trf.xlu0  ;;  %v229_v16 = vld [vmem:[#allocation2 + $0x30] ss:$2 sm:$0xff]  ;;  %v359_v36 = vld [vmem:[#allocation2 + $0x31] ss:$2 sm:$0xff]  ;;  %v118_v48 = vpop.trf.xlu1 }
  0xec   :  { %167 = vst.msk [vmem:[#allocation2 + $0x40] sm:$0xff] %vm158_vm0, %v54_v15  ;;  %289 = vxpose.xlu2.b32.cont [4/16] (narrow) %v229_v16, 8  ;;  %v391_v49 = vld [vmem:[#allocation2 + $0x131] ss:$2 sm:$0xff] }
  0xed   :  { %199 = vst.msk [vmem:[#allocation2 + $0x140] sm:$0xff] %vm158_vm0, %v118_v48 }
  0xf3   :  { %v55_v17 = vpop.trf.xlu0  ;;  %v119_v53 = vpop.trf.xlu1 }
  0xf4   :  { %168 = vst.msk [vmem:[#allocation2 + $0x48] sm:$0xff] %vm158_vm0, %v55_v17 }
  0xf5   :  { %200 = vst.msk [vmem:[#allocation2 + $0x148] sm:$0xff] %vm158_vm0, %v119_v53 }
  0xfb   :  { %v56_v19 = vpop.trf.xlu0  ;;  %v231_v20 = vld [vmem:[#allocation2 + $0x40] ss:$2 sm:$0xff]  ;;  %v361_v39 = vld [vmem:[#allocation2 + $0x41] ss:$2 sm:$0xff]  ;;  %v120_v56 = vpop.trf.xlu1 }
  0xfc   :  { %169 = vst.msk [vmem:[#allocation2 + $0x50] sm:$0xff] %vm158_vm0, %v56_v19  ;;  %290 = vxpose.xlu2.b32.cont [5/16] (narrow) %v231_v20, 8  ;;  %v393_v57 = vld [vmem:[#allocation2 + $0x141] ss:$2 sm:$0xff] }
  0xfd   :  { %201 = vst.msk [vmem:[#allocation2 + $0x150] sm:$0xff] %vm158_vm0, %v120_v56 }
 0x103   :  { %v57_v22 = vpop.trf.xlu0  ;;  %v121_v61 = vpop.trf.xlu1 }
 0x104   :  { %170 = vst.msk [vmem:[#allocation2 + $0x58] sm:$0xff] %vm158_vm0, %v57_v22 }
 0x105   :  { %202 = vst.msk [vmem:[#allocation2 + $0x158] sm:$0xff] %vm158_vm0, %v121_v61 }
 0x107   :  { %416 = vxpose.xlu0.b32.start [1/16] (narrow) %v353_v23, 8  ;;  %448 = vxpose.xlu1.b32.start [1/16] (narrow) %v385_v25, 8 }
 0x10b   :  { %v58_v26 = vpop.trf.xlu0  ;;  %v233_v27 = vld [vmem:[#allocation2 + $0x50] ss:$2 sm:$0xff]  ;;  %v363_v44 = vld [vmem:[#allocation2 + $0x51] ss:$2 sm:$0xff]  ;;  %v122_v63 = vpop.trf.xlu1 }
 0x10c   :  { %171 = vst.msk [vmem:[#allocation2 + $0x60] sm:$0xff] %vm158_vm0, %v58_v26  ;;  %291 = vxpose.xlu2.b32.cont [6/16] (narrow) %v233_v27, 8  ;;  %v395_v0 = vld [vmem:[#allocation2 + $0x151] ss:$2 sm:$0xff] }
 0x10d   :  { %203 = vst.msk [vmem:[#allocation2 + $0x160] sm:$0xff] %vm158_vm0, %v122_v63 }
 0x10f   :  { %417 = vxpose.xlu0.b32.cont [2/16] (narrow) %v355_v28, 8  ;;  %449 = vxpose.xlu1.b32.cont [2/16] (narrow) %v387_v33, 8 }
 0x113   :  { %v59_v30 = vpop.trf.xlu0  ;;  %v123_v4 = vpop.trf.xlu1 }
 0x114   :  { %172 = vst.msk [vmem:[#allocation2 + $0x68] sm:$0xff] %vm158_vm0, %v59_v30 }
 0x115   :  { %204 = vst.msk [vmem:[#allocation2 + $0x168] sm:$0xff] %vm158_vm0, %v123_v4 }
 0x117   :  { %418 = vxpose.xlu0.b32.cont [3/16] (narrow) %v357_v31, 8  ;;  %450 = vxpose.xlu1.b32.cont [3/16] (narrow) %v389_v41, 8 }
 0x11b   :  { %v60_v34 = vpop.trf.xlu0  ;;  %v235_v35 = vld [vmem:[#allocation2 + $0x60] ss:$2 sm:$0xff]  ;;  %v365_v47 = vld [vmem:[#allocation2 + $0x61] ss:$2 sm:$0xff]  ;;  %v124_v6 = vpop.trf.xlu1 }
 0x11c   :  { %173 = vst.msk [vmem:[#allocation2 + $0x70] sm:$0xff] %vm158_vm0, %v60_v34  ;;  %292 = vxpose.xlu2.b32.cont [7/16] (narrow) %v235_v35, 8  ;;  %v397_v7 = vld [vmem:[#allocation2 + $0x161] ss:$2 sm:$0xff] }
 0x11d   :  { %205 = vst.msk [vmem:[#allocation2 + $0x170] sm:$0xff] %vm158_vm0, %v124_v6 }
 0x11f   :  { %419 = vxpose.xlu0.b32.cont [4/16] (narrow) %v359_v36, 8  ;;  %451 = vxpose.xlu1.b32.cont [4/16] (narrow) %v391_v49, 8  ;;  %v263_v49 = vld [vmem:[#allocation2 + $0x140] ss:$2 sm:$0xff] }
 0x123   :  { %v61_v38 = vpop.trf.xlu0  ;;  %v125_v11 = vpop.trf.xlu1 }
 0x124   :  { %174 = vst.msk [vmem:[#allocation2 + $0x78] sm:$0xff] %vm158_vm0, %v61_v38 }
 0x125   :  { %206 = vst.msk [vmem:[#allocation2 + $0x178] sm:$0xff] %vm158_vm0, %v125_v11 }
 0x127   :  { %420 = vxpose.xlu0.b32.cont [5/16] (narrow) %v361_v39, 8  ;;  %452 = vxpose.xlu1.b32.cont [5/16] (narrow) %v393_v57, 8  ;;  %v255_v39 = vld [vmem:[#allocation2 + $0x100] ss:$2 sm:$0xff] }
 0x12b   :  { %v78_v42 = vpop.trf.xlu0  ;;  %v237_v43 = vld [vmem:[#allocation2 + $0x70] ss:$2 sm:$0xff]  ;;  %v367_v52 = vld [vmem:[#allocation2 + $0x71] ss:$2 sm:$0xff]  ;;  %v142_v13 = vpop.trf.xlu1 }
 0x12c   :  { %175 = vst.msk [vmem:[#allocation2 + $0x80] sm:$0xff] %vm158_vm0, %v78_v42  ;;  %293 = vxpose.xlu2.b32.cont [8/16] (narrow) %v237_v43, 8  ;;  %v399_v14 = vld [vmem:[#allocation2 + $0x171] ss:$2 sm:$0xff]  ;;  %v257_v42 = vld [vmem:[#allocation2 + $0x110] ss:$2 sm:$0xff] }
 0x12d   :  { %207 = vst.msk [vmem:[#allocation2 + $0x180] sm:$0xff] %vm158_vm0, %v142_v13  ;;  %v269_v57 = vld [vmem:[#allocation2 + $0x170] ss:$2 sm:$0xff] }
 0x12f   :  { %421 = vxpose.xlu0.b32.cont [6/16] (narrow) %v363_v44, 8  ;;  %453 = vxpose.xlu1.b32.cont [6/16] (narrow) %v395_v0, 8  ;;  %v259_v44 = vld [vmem:[#allocation2 + $0x120] ss:$2 sm:$0xff] }
 0x133   :  { %v79_v46 = vpop.trf.xlu0  ;;  %v143_v18 = vpop.trf.xlu1 }
 0x134   :  { %176 = vst.msk [vmem:[#allocation2 + $0x88] sm:$0xff] %vm158_vm0, %v79_v46 }
 0x135   :  { %208 = vst.msk [vmem:[#allocation2 + $0x188] sm:$0xff] %vm158_vm0, %v143_v18 }
 0x137   :  { %422 = vxpose.xlu0.b32.cont [7/16] (narrow) %v365_v47, 8  ;;  %454 = vxpose.xlu1.b32.cont [7/16] (narrow) %v397_v7, 8  ;;  %v261_v47 = vld [vmem:[#allocation2 + $0x130] ss:$2 sm:$0xff] }
 0x13b   :  { %v80_v50 = vpop.trf.xlu0  ;;  %v239_v51 = vld [vmem:[#allocation2 + $0x80] ss:$2 sm:$0xff]  ;;  %v369_v55 = vld [vmem:[#allocation2 + $0x81] ss:$2 sm:$0xff]  ;;  %v144_v20 = vpop.trf.xlu1 }
 0x13c   :  { %177 = vst.msk [vmem:[#allocation2 + $0x90] sm:$0xff] %vm158_vm0, %v80_v50  ;;  %294 = vxpose.xlu2.b32.cont [9/16] (narrow) %v239_v51, 8  ;;  %v401_v21 = vld [vmem:[#allocation2 + $0x181] ss:$2 sm:$0xff] }
 0x13d   :  { %209 = vst.msk [vmem:[#allocation2 + $0x190] sm:$0xff] %vm158_vm0, %v144_v20 }
 0x13f   :  { %423 = vxpose.xlu0.b32.cont [8/16] (narrow) %v367_v52, 8  ;;  %455 = vxpose.xlu1.b32.cont [8/16] (narrow) %v399_v14, 8  ;;  %v265_v52 = vld [vmem:[#allocation2 + $0x150] ss:$2 sm:$0xff] }
 0x143   :  { %v81_v54 = vpop.trf.xlu0  ;;  %v145_v25 = vpop.trf.xlu1 }
 0x144   :  { %178 = vst.msk [vmem:[#allocation2 + $0x98] sm:$0xff] %vm158_vm0, %v81_v54  ;;  %v267_v54 = vld [vmem:[#allocation2 + $0x160] ss:$2 sm:$0xff] }
 0x145   :  { %210 = vst.msk [vmem:[#allocation2 + $0x198] sm:$0xff] %vm158_vm0, %v145_v25 }
 0x147   :  { %424 = vxpose.xlu0.b32.cont [9/16] (narrow) %v369_v55, 8  ;;  %456 = vxpose.xlu1.b32.cont [9/16] (narrow) %v401_v21, 8 }
 0x14b   :  { %v82_v58 = vpop.trf.xlu0  ;;  %v241_v59 = vld [vmem:[#allocation2 + $0x90] ss:$2 sm:$0xff]  ;;  %v371_v60 = vld [vmem:[#allocation2 + $0x91] ss:$2 sm:$0xff]  ;;  %v146_v27 = vpop.trf.xlu1 }
 0x14c   :  { %179 = vst.msk [vmem:[#allocation2 + $0xa0] sm:$0xff] %vm158_vm0, %v82_v58  ;;  %295 = vxpose.xlu2.b32.cont [10/16] (narrow) %v241_v59, 8  ;;  %v403_v28 = vld [vmem:[#allocation2 + $0x191] ss:$2 sm:$0xff]  ;;  %v271_v59 = vld [vmem:[#allocation2 + $0x180] ss:$2 sm:$0xff] }
 0x14d   :  { %211 = vst.msk [vmem:[#allocation2 + $0x1a0] sm:$0xff] %vm158_vm0, %v146_v27  ;;  %v273_v61 = vld [vmem:[#allocation2 + $0x190] ss:$2 sm:$0xff] }
 0x14f   :  { %425 = vxpose.xlu0.b32.cont [10/16] (narrow) %v371_v60, 8  ;;  %457 = vxpose.xlu1.b32.cont [10/16] (narrow) %v403_v28, 8 }
 0x153   :  { %v83_v62 = vpop.trf.xlu0  ;;  %v147_v32 = vpop.trf.xlu1 }
 0x154   :  { %180 = vst.msk [vmem:[#allocation2 + $0xa8] sm:$0xff] %vm158_vm0, %v83_v62 }
 0x155   :  { %212 = vst.msk [vmem:[#allocation2 + $0x1a8] sm:$0xff] %vm158_vm0, %v147_v32 }
 0x15b   :  { %v84_v1 = vpop.trf.xlu0  ;;  %v373_v2 = vld [vmem:[#allocation2 + $0xa1] ss:$2 sm:$0xff]  ;;  %v243_v3 = vld [vmem:[#allocation2 + $0xa0] ss:$2 sm:$0xff]  ;;  %v148_v34 = vpop.trf.xlu1 }
 0x15c   :  { %181 = vst.msk [vmem:[#allocation2 + $0xb0] sm:$0xff] %vm158_vm0, %v84_v1  ;;  %426 = vxpose.xlu0.b32.cont [11/16] (narrow) %v373_v2, 8  ;;  %296 = vxpose.xlu2.b32.cont [11/16] (narrow) %v243_v3, 8  ;;  %v405_v35 = vld [vmem:[#allocation2 + $0x1a1] ss:$2 sm:$0xff] }
 0x15d   :  { %213 = vst.msk [vmem:[#allocation2 + $0x1b0] sm:$0xff] %vm158_vm0, %v148_v34  ;;  %458 = vxpose.xlu1.b32.cont [11/16] (narrow) %v405_v35, 8  ;;  %v275_v62 = vld [vmem:[#allocation2 + $0x1a0] ss:$2 sm:$0xff] }
 0x163   :  { %v85_v5 = vpop.trf.xlu0  ;;  %v149_v38 = vpop.trf.xlu1 }
 0x164   :  { %182 = vst.msk [vmem:[#allocation2 + $0xb8] sm:$0xff] %vm158_vm0, %v85_v5 }
 0x165   :  { %214 = vst.msk [vmem:[#allocation2 + $0x1b8] sm:$0xff] %vm158_vm0, %v149_v38 }
 0x16b   :  { %v86_v8 = vpop.trf.xlu0  ;;  %v375_v9 = vld [vmem:[#allocation2 + $0xb1] ss:$2 sm:$0xff]  ;;  %v245_v10 = vld [vmem:[#allocation2 + $0xb0] ss:$2 sm:$0xff]  ;;  %v150_v40 = vpop.trf.xlu1 }
 0x16c   :  { %183 = vst.msk [vmem:[#allocation2 + $0xc0] sm:$0xff] %vm158_vm0, %v86_v8  ;;  %427 = vxpose.xlu0.b32.cont [12/16] (narrow) %v375_v9, 8  ;;  %297 = vxpose.xlu2.b32.cont [12/16] (narrow) %v245_v10, 8  ;;  %v407_v41 = vld [vmem:[#allocation2 + $0x1b1] ss:$2 sm:$0xff] }
 0x16d   :  { %215 = vst.msk [vmem:[#allocation2 + $0x1c0] sm:$0xff] %vm158_vm0, %v150_v40  ;;  %459 = vxpose.xlu1.b32.cont [12/16] (narrow) %v407_v41, 8  ;;  %v277_v63 = vld [vmem:[#allocation2 + $0x1b0] ss:$2 sm:$0xff] }
 0x173   :  { %v87_v12 = vpop.trf.xlu0  ;;  %v151_v43 = vpop.trf.xlu1 }
 0x174   :  { %184 = vst.msk [vmem:[#allocation2 + $0xc8] sm:$0xff] %vm158_vm0, %v87_v12 }
 0x175   :  { %216 = vst.msk [vmem:[#allocation2 + $0x1c8] sm:$0xff] %vm158_vm0, %v151_v43 }
 0x17b   :  { %v88_v15 = vpop.trf.xlu0  ;;  %v377_v16 = vld [vmem:[#allocation2 + $0xc1] ss:$2 sm:$0xff]  ;;  %v247_v17 = vld [vmem:[#allocation2 + $0xc0] ss:$2 sm:$0xff]  ;;  %v152_v45 = vpop.trf.xlu1 }
 0x17c   :  { %185 = vst.msk [vmem:[#allocation2 + $0xd0] sm:$0xff] %vm158_vm0, %v88_v15  ;;  %428 = vxpose.xlu0.b32.cont [13/16] (narrow) %v377_v16, 8  ;;  %298 = vxpose.xlu2.b32.cont [13/16] (narrow) %v247_v17, 8  ;;  %v409_v46 = vld [vmem:[#allocation2 + $0x1c1] ss:$2 sm:$0xff] }
 0x17d   :  { %217 = vst.msk [vmem:[#allocation2 + $0x1d0] sm:$0xff] %vm158_vm0, %v152_v45  ;;  %460 = vxpose.xlu1.b32.cont [13/16] (narrow) %v409_v46, 8  ;;  %v279_v2 = vld [vmem:[#allocation2 + $0x1c0] ss:$2 sm:$0xff] }
 0x183   :  { %v89_v19 = vpop.trf.xlu0  ;;  %v153_v48 = vpop.trf.xlu1 }
 0x184   :  { %186 = vst.msk [vmem:[#allocation2 + $0xd8] sm:$0xff] %vm158_vm0, %v89_v19 }
 0x185   :  { %218 = vst.msk [vmem:[#allocation2 + $0x1d8] sm:$0xff] %vm158_vm0, %v153_v48 }
 0x18b   :  { %v90_v22 = vpop.trf.xlu0  ;;  %v379_v23 = vld [vmem:[#allocation2 + $0xd1] ss:$2 sm:$0xff]  ;;  %v249_v24 = vld [vmem:[#allocation2 + $0xd0] ss:$2 sm:$0xff]  ;;  %v154_v50 = vpop.trf.xlu1 }
 0x18c   :  { %187 = vst.msk [vmem:[#allocation2 + $0xe0] sm:$0xff] %vm158_vm0, %v90_v22  ;;  %429 = vxpose.xlu0.b32.cont [14/16] (narrow) %v379_v23, 8  ;;  %299 = vxpose.xlu2.b32.cont [14/16] (narrow) %v249_v24, 8  ;;  %v411_v51 = vld [vmem:[#allocation2 + $0x1d1] ss:$2 sm:$0xff] }
 0x18d   :  { %219 = vst.msk [vmem:[#allocation2 + $0x1e0] sm:$0xff] %vm158_vm0, %v154_v50  ;;  %461 = vxpose.xlu1.b32.cont [14/16] (narrow) %v411_v51, 8  ;;  %v281_v3 = vld [vmem:[#allocation2 + $0x1d0] ss:$2 sm:$0xff] }
 0x193   :  { %v91_v26 = vpop.trf.xlu0  ;;  %v155_v53 = vpop.trf.xlu1 }
 0x194   :  { %188 = vst.msk [vmem:[#allocation2 + $0xe8] sm:$0xff] %vm158_vm0, %v91_v26 }
 0x195   :  { %220 = vst.msk [vmem:[#allocation2 + $0x1e8] sm:$0xff] %vm158_vm0, %v155_v53 }
 0x19b   :  { %v92_v29 = vpop.trf.xlu0  ;;  %v381_v30 = vld [vmem:[#allocation2 + $0xe1] ss:$2 sm:$0xff]  ;;  %v251_v31 = vld [vmem:[#allocation2 + $0xe0] ss:$2 sm:$0xff]  ;;  %v156_v55 = vpop.trf.xlu1 }
 0x19c   :  { %189 = vst.msk [vmem:[#allocation2 + $0xf0] sm:$0xff] %vm158_vm0, %v92_v29  ;;  %430 = vxpose.xlu0.b32.cont [15/16] (narrow) %v381_v30, 8  ;;  %300 = vxpose.xlu2.b32.cont [15/16] (narrow) %v251_v31, 8  ;;  %v413_v56 = vld [vmem:[#allocation2 + $0x1e1] ss:$2 sm:$0xff] }
 0x19d   :  { %221 = vst.msk [vmem:[#allocation2 + $0x1f0] sm:$0xff] %vm158_vm0, %v156_v55  ;;  %462 = vxpose.xlu1.b32.cont [15/16] (narrow) %v413_v56, 8  ;;  %v283_v4 = vld [vmem:[#allocation2 + $0x1e0] ss:$2 sm:$0xff] }
 0x1a3   :  { %v93_v33 = vpop.trf.xlu0  ;;  %v157_v58 = vpop.trf.xlu1 }
 0x1a4   :  { %190 = vst.msk [vmem:[#allocation2 + $0xf8] sm:$0xff] %vm158_vm0, %v93_v33 }
 0x1a5   :  { %222 = vst.msk [vmem:[#allocation2 + $0x1f8] sm:$0xff] %vm158_vm0, %v157_v58 }
 0x1ab   :  { %v383_v36 = vld [vmem:[#allocation2 + $0xf1] ss:$2 sm:$0xff]  ;;  %v253_v37 = vld [vmem:[#allocation2 + $0xf0] ss:$2 sm:$0xff] }
 0x1ac   :  { %431 = vxpose.xlu0.b32.end [16/16] (narrow) %v383_v36, 8  ;;  %301 = vxpose.xlu2.b32.end [16/16] (narrow) %v253_v37, 8  ;;  %v415_v60 = vld [vmem:[#allocation2 + $0x1f1] ss:$2 sm:$0xff]  ;;  %v285_v6 = vld [vmem:[#allocation2 + $0x1f0] ss:$2 sm:$0xff] }
 0x1ad   :  { %463 = vxpose.xlu1.b32.end [16/16] (narrow) %v415_v60, 8 }
 0x1b4   :  { %318 = vxpose.xlu2.b32.start [1/16] (narrow) %v255_v39, 8 }
 0x1bc   :  { %319 = vxpose.xlu2.b32.cont [2/16] (narrow) %v257_v42, 8 }
 0x1c4   :  { %320 = vxpose.xlu2.b32.cont [3/16] (narrow) %v259_v44, 8 }
 0x1cc   :  { %321 = vxpose.xlu2.b32.cont [4/16] (narrow) %v261_v47, 8 }
 0x1cd   :  { %v302_v0 = vpop.trf.xlu2 }
 0x1ce   :  { %350 = vst [vmem:[#allocation6] sm:$0xff] %v302_v0 }
 0x1d4   :  { %322 = vxpose.xlu2.b32.cont [5/16] (narrow) %v263_v49, 8 }
 0x1d8   :  { %v432_v1 = vpop.trf.xlu0 }
 0x1d9   :  { %480 = vst [vmem:[#allocation7] sm:$0xff] %v432_v1  ;;  %v464_v5 = vpop.trf.xlu1 }
 0x1da   :  { %481 = vst [vmem:[#allocation7 + $0x8] sm:$0xff] %v464_v5 }
 0x1db   :  { %503 = dma.vmem_to_hbm [thread:$0]  %s499_s14, 256, %s501_s17, [#allocation8]  }
 0x1dc   :  { %323 = vxpose.xlu2.b32.cont [6/16] (narrow) %v265_v52, 8 }
 0x1e4   :  { %324 = vxpose.xlu2.b32.cont [7/16] (narrow) %v267_v54, 8 }
 0x1ec   :  { %325 = vxpose.xlu2.b32.cont [8/16] (narrow) %v269_v57, 8 }
 0x1f4   :  { %326 = vxpose.xlu2.b32.cont [9/16] (narrow) %v271_v59, 8 }
 0x1fc   :  { %327 = vxpose.xlu2.b32.cont [10/16] (narrow) %v273_v61, 8 }
 0x204   :  { %328 = vxpose.xlu2.b32.cont [11/16] (narrow) %v275_v62, 8 }
 0x20c   :  { %329 = vxpose.xlu2.b32.cont [12/16] (narrow) %v277_v63, 8 }
 0x214   :  { %330 = vxpose.xlu2.b32.cont [13/16] (narrow) %v279_v2, 8 }
 0x21c   :  { %331 = vxpose.xlu2.b32.cont [14/16] (narrow) %v281_v3, 8 }
 0x224   :  { %332 = vxpose.xlu2.b32.cont [15/16] (narrow) %v283_v4, 8 }
 0x22c   :  { %333 = vxpose.xlu2.b32.end [16/16] (narrow) %v285_v6, 8 }
 0x24d   :  { %v334_v7 = vpop.trf.xlu2 }
 0x24e   :  { %351 = vst [vmem:[#allocation6 + $0x8] sm:$0xff] %v334_v7 }
 0x24f   :  { %492 = dma.vmem_to_hbm [thread:$0]  %s488_s19, 256, %s490_s22, [#allocation5]  }
 0x250   :  { %593 = dma.done.wait [#allocation5], 256  }
 0x251   :  { %594 = vsyncadd [#allocation5], 4294967040 }
 0x252   :  { %595 = dma.done.wait [#allocation8], 256  }
 0x253   :  { %596 = vsyncadd [#allocation8], 4294967040 }
 0x254   :  { %512 = vsyncpa [#allocation4], 1 }
 0x255   :  { %513 = vsyncpa [#allocation5], 1 }
 0x256   :  { %514 = vsyncpa [#allocation8], 1 }

</bundles_post_ra>
